<compile_context>
chip_gen: v6e
topology: v6e:2x2x1
jax: 0.10.0
libtpu: 0.0.40
codegen_flags: <defaults>
</compile_context>

<pallas_src>
import functools

import jax
import jax.numpy as jnp
from jax.experimental import pallas as pl
from jax.experimental.pallas import tpu as pltpu

EPS = 1e-5
LANE = 128
SUBLANE = 8
MXU_DTYPE = jnp.bfloat16  # MXU operand dtype; accumulation & BN stay f32.


def _round_up(n, m):
    return ((n + m - 1) // m) * m


def _cdiv(a, b):
    return (a + b - 1) // b


def _vmem_capacity_bytes():
    """Physical VMEM per TensorCore; conservative fallback if the query fails."""
    try:
        return int(pltpu.get_tpu_info().vmem_capacity_bytes)
    except Exception:
        return 64 * 1024 * 1024  # v7x per-TC size == safe lower bound everywhere


def _vmem_need_bytes(B, s_tile, din_p, dh_p, dout_p, resident_bytes,
                     in_itemsize, out_itemsize):
    """VMEM working set for one S-tile: double-buffered streamed tiles,
    single-buffered resident params, and three chained f32 intermediates."""
    m = B * s_tile
    streamed_in = 2 * m * din_p * in_itemsize      # x tile, double buffered
    streamed_out = 2 * m * dout_p * out_itemsize   # output tile, double buffered
    intermediates = 3 * m * dh_p * 4               # live f32 activations in the body
    affines = 2 * 6 * s_tile * 4                   # six (1, s_tile, 1) gamma/beta tiles
    return streamed_in + streamed_out + intermediates + resident_bytes + affines


def _pick_s_tile(S, B, din_p, dh_p, dout_p, resident_bytes,
                 in_itemsize, out_itemsize, vmem_target):
    """Largest multiple-of-8 S tile whose working set fits the per-chip VMEM
    target (accounts for B via M = B*s_tile).  Prefers an even grid count
    (v7x has two TensorCores) when it costs at most one extra step and at most
    a 2x smaller tile."""
    s_cap = _round_up(min(S, 1024), SUBLANE)
    candidates = list(range(SUBLANE, s_cap + 1, SUBLANE))
    fitting = [t for t in candidates
               if _vmem_need_bytes(B, t, din_p, dh_p, dout_p, resident_bytes,
                                   in_itemsize, out_itemsize) <= vmem_target]
    if not fitting:
        fitting = [SUBLANE]
    s_tile = fitting[-1]
    grid_n = _cdiv(S, s_tile)
    if grid_n > 1 and grid_n % 2 == 1:
        for t in reversed(fitting):
            g = _cdiv(S, t)
            if g % 2 == 0 and g <= grid_n + 1 and 2 * t >= s_tile:
                s_tile = t
                break
    return s_tile


def mlp_projector_kernel(
    x_ref,
    w1_ref, b1_ref, g1_ref, be1_ref,
    w2_ref, b2_ref, g2_ref, be2_ref,
    w3_ref, b3_ref, g3_ref, be3_ref,
    o_ref,
    *, n_feat1, n_feat2, n_feat3,
):
    B, S_T, _ = x_ref.shape
    M = B * S_T

    # Hoisted parameter reads -- once per S-tile (weights are VMEM-resident).
    w1, b1 = w1_ref[...], b1_ref[...]
    w2, b2 = w2_ref[...], b2_ref[...]
    w3, b3 = w3_ref[...], b3_ref[...]
    g1, be1 = g1_ref[...], be1_ref[...]
    g2, be2 = g2_ref[...], be2_ref[...]
    g3, be3 = g3_ref[...], be3_ref[...]

    def layer(h2d_lp, w, b, g, be, n_real, relu):
        # h2d_lp: (M, K) bf16, w: (K, N) bf16 (K-major), b: (1, N) f32.
        h = jnp.dot(h2d_lp, w, preferred_element_type=jnp.float32) + b   # (M, N)
        h = h.reshape(B, S_T, -1)                                        # (B, S_T, N)
        # BatchNorm1d(S): per-S-channel stats over (batch, feature).  Padded
        # feature lanes are exactly zero -> sums unaffected; divide by the
        # real count.  One fused pass: sum and sum-of-squares together.
        inv_n = 1.0 / float(n_real)
        mu = jnp.sum(h, axis=(0, 2), keepdims=True) * inv_n              # (1, S_T, 1)
        ex2 = jnp.sum(h * h, axis=(0, 2), keepdims=True) * inv_n
        var = jnp.maximum(ex2 - mu * mu, 0.0)
        scale = g * jax.lax.rsqrt(var + EPS)                             # (1, S_T, 1)
        shift = be - mu * scale
        h = h * scale + shift
        if relu:
            h = jnp.maximum(h, 0.0)
        return h

    x2d = x_ref[...].astype(MXU_DTYPE).reshape(M, -1)
    h = layer(x2d, w1, b1, g1, be1, B * n_feat1, relu=True)
    h = layer(h.reshape(M, -1).astype(MXU_DTYPE), w2, b2, g2, be2, B * n_feat2, relu=True)
    h = layer(h.reshape(M, -1).astype(MXU_DTYPE), w3, b3, g3, be3, B * n_feat3, relu=False)

    o_ref[...] = h.astype(o_ref.dtype)   # lane-dense (padded) store


def mlp_projector(x, params, *, s_tile=None, out_dtype=jnp.float32):
    """x: (B, S, in_dim) float32.  params: dict from init_params (PyTorch shapes)."""
    B, S, in_dim = x.shape
    hidden_dim = params["w1"].shape[0]
    out_dim = params["w3"].shape[0]

    din_p = _round_up(in_dim, LANE)
    dh_p = _round_up(hidden_dim, LANE)
    dout_p = _round_up(out_dim, LANE)

    # ---- resident parameters: K-major, lane-padded, bf16 ----
    def prep_linear(w, b, k_pad, n_pad):
        # PyTorch (Dout, Din) -> K-major (Din_pad, Dout_pad) bf16; bias (1, N_pad) f32.
        wt = jnp.transpose(w)
        wt = jnp.pad(wt, ((0, k_pad - wt.shape[0]), (0, n_pad - wt.shape[1])))
        bp = jnp.pad(b.reshape(1, -1), ((0, 0), (0, n_pad - b.shape[0])))
        return wt.astype(MXU_DTYPE), bp.astype(jnp.float32)

    w1p, b1p = prep_linear(params["w1"], params["b1"], din_p, dh_p)
    w2p, b2p = prep_linear(params["w2"], params["b2"], dh_p, dh_p)
    w3p, b3p = prep_linear(params["w3"], params["b3"], dh_p, dout_p)

    resident_bytes = (
        (din_p * dh_p + dh_p * dh_p + dh_p * dout_p) * 2   # bf16 weights, Buffered(1)
        + (dh_p + dh_p + dout_p) * 4                        # f32 biases,   Buffered(1)
    )

    # ---- chip-aware S-tile selection & VMEM budget ----
    vmem_cap = _vmem_capacity_bytes()
    vmem_target = int(vmem_cap * 0.75)          # leave headroom for compiler scratch
    in_itemsize = 4                             # x streamed as f32
    out_itemsize = jnp.dtype(out_dtype).itemsize

    if s_tile is None:
        s_tile = _pick_s_tile(S, B, din_p, dh_p, dout_p, resident_bytes,
                              in_itemsize, out_itemsize, vmem_target)
    s_tile = _round_up(int(s_tile), SUBLANE)

    grid_n = _cdiv(S, s_tile)
    S_pad = grid_n * s_tile

    need = _vmem_need_bytes(B, s_tile, din_p, dh_p, dout_p, resident_bytes,
                            in_itemsize, out_itemsize)
    vmem_limit = int(min(vmem_cap * 0.9, max(need * 1.3, 32 * 1024 * 1024)))

    # ---- padded operands (zeros keep BN sums exact; divide by real count) ----
    x_p = jnp.pad(x.astype(jnp.float32),
                  ((0, 0), (0, S_pad - S), (0, din_p - in_dim)))

    def prep_affine(g, be):
        gp = jnp.pad(g.astype(jnp.float32), (0, S_pad - S)).reshape(1, S_pad, 1)
        bep = jnp.pad(be.astype(jnp.float32), (0, S_pad - S)).reshape(1, S_pad, 1)
        return gp, bep

    g1r, be1r = prep_affine(params["g1"], params["be1"])
    g2r, be2r = prep_affine(params["g2"], params["be2"])
    g3r, be3r = prep_affine(params["g3"], params["be3"])

    # ---- block specs ----
    def seq_spec(d):               # streamed per S-tile
        return pl.BlockSpec((B, s_tile, d), lambda s: (0, s, 0))

    def resident_spec(shape):      # constant index_map + single buffer -> VMEM-resident
        index_map = lambda s: tuple(0 for _ in shape)
        try:
            return pl.BlockSpec(shape, index_map, pipeline_mode=pl.Buffered(1))
        except Exception:
            return pl.BlockSpec(shape, index_map)

    def affine_spec():
        return pl.BlockSpec((1, s_tile, 1), lambda s: (0, s, 0))

    in_specs = [
        seq_spec(din_p),
        resident_spec((din_p, dh_p)), resident_spec((1, dh_p)), affine_spec(), affine_spec(),
        resident_spec((dh_p, dh_p)), resident_spec((1, dh_p)), affine_spec(), affine_spec(),
        resident_spec((dh_p, dout_p)), resident_spec((1, dout_p)), affine_spec(), affine_spec(),
    ]
    out_specs = seq_spec(dout_p)

    # ---- advisory cost estimate for the XLA scheduler ----
    flops = 2 * B * S_pad * (din_p * dh_p + dh_p * dh_p + dh_p * dout_p)
    bytes_accessed = (
        B * S_pad * din_p * 4                                   # x
        + B * S_pad * dout_p * out_itemsize                     # out
        + (din_p * dh_p + dh_p * dh_p + dh_p * dout_p) * 2      # weights
        + (2 * dh_p + dout_p) * 4 + 6 * S_pad * 4               # biases + gammas/betas
    )
    cost = pl.CostEstimate(flops=flops, transcendentals=3 * S_pad,
                           bytes_accessed=bytes_accessed)

    kern = functools.partial(
        mlp_projector_kernel,
        n_feat1=hidden_dim, n_feat2=hidden_dim, n_feat3=out_dim,
    )

    out_p = pl.pallas_call(
        kern,
        out_shape=jax.ShapeDtypeStruct((B, S_pad, dout_p), out_dtype),
        grid=(grid_n,),
        in_specs=in_specs,
        out_specs=out_specs,
        compiler_params=pltpu.CompilerParams(
            dimension_semantics=("parallel",),
            vmem_limit_bytes=vmem_limit,
        ),
        cost_estimate=cost,
    )(x_p, w1p, b1p, g1r, be1r, w2p, b2p, g2r, be2r, w3p, b3p, g3r, be3r)

    return out_p[:, :S, :out_dim]   # drop padded rows / lanes


def init_params(key, in_dim, hidden_dim, out_dim, seq):
    """Deterministic synthetic parameters in PyTorch shapes."""
    ks = jax.random.split(key, 12)

    def lin(kw, kb, dout, din):
        bound = 1.0 / jnp.sqrt(din)
        w = jax.random.uniform(kw, (dout, din), jnp.float32, -bound, bound)
        b = jax.random.uniform(kb, (dout,), jnp.float32, -bound, bound)
        return w, b

    w1, b1 = lin(ks[0], ks[1], hidden_dim, in_dim)
    w2, b2 = lin(ks[2], ks[3], hidden_dim, hidden_dim)
    w3, b3 = lin(ks[4], ks[5], out_dim, hidden_dim)

    def affine(kg, kb):
        g = 1.0 + 0.1 * jax.random.normal(kg, (seq,), jnp.float32)
        be = 0.1 * jax.random.normal(kb, (seq,), jnp.float32)
        return g, be

    g1, be1 = affine(ks[6], ks[7])
    g2, be2 = affine(ks[8], ks[9])
    g3, be3 = affine(ks[10], ks[11])

    return dict(w1=w1, b1=b1, g1=g1, be1=be1,
                w2=w2, b2=b2, g2=g2, be2=be2,
                w3=w3, b3=b3, g3=g3, be3=be3)


def _reference(x, p):
    """Pure-JAX reference of the PyTorch forward (train-mode BN), mirroring the
    kernel's bf16-operand / f32-accumulate matmul policy."""
    def layer(h, w, b, g, be, relu):
        h = jnp.einsum("bsd,do->bso",
                       h.astype(MXU_DTYPE), w.T.astype(MXU_DTYPE),
                       preferred_element_type=jnp.float32) + b.reshape(1, 1, -1)
        mu = jnp.mean(h, axis=(0, 2), keepdims=True)
        var = jnp.mean((h - mu) ** 2, axis=(0, 2), keepdims=True)
        h = (h - mu) / jnp.sqrt(var + EPS) * g.reshape(1, -1, 1) + be.reshape(1, -1, 1)
        return jnp.maximum(h, 0.0) if relu else h

    h = layer(x, p["w1"], p["b1"], p["g1"], p["be1"], True)
    h = layer(h, p["w2"], p["b2"], p["g2"], p["be2"], True)
    h = layer(h, p["w3"], p["b3"], p["g3"], p["be3"], False)
    return h


if __name__ == "__main__":
    B, S, IN_DIM, HIDDEN, OUT_DIM = 2, 8, 16, 32, 24

    key = jax.random.PRNGKey(0)
    kx, kp = jax.random.split(key)
    x = jax.random.normal(kx, (B, S, IN_DIM), jnp.float32)
    params = init_params(kp, IN_DIM, HIDDEN, OUT_DIM, S)

    out = jax.block_until_ready(mlp_projector(x, params))

    ref = _reference(x, params)
    assert out.shape == (B, S, OUT_DIM)
    assert jnp.allclose(out, ref, atol=1e-3, rtol=1e-3), (
        "mismatch vs reference, max abs diff = "
        + str(float(jnp.max(jnp.abs(out - ref)))))

    print("KERNEL_OK")
</pallas_src>

<mosaic_0001>
module attributes {stable_mosaic.version = 11 : i64} {
  func.func @mlp_projector_kernel(%arg0: i32, %arg1: memref<2x8x128xf32, #tpu.memory_space<vmem>>, %arg2: memref<128x128xbf16, #tpu.memory_space<vmem>>, %arg3: memref<1x128xf32, #tpu.memory_space<vmem>>, %arg4: memref<1x8x1xf32, #tpu.memory_space<vmem>>, %arg5: memref<1x8x1xf32, #tpu.memory_space<vmem>>, %arg6: memref<128x128xbf16, #tpu.memory_space<vmem>>, %arg7: memref<1x128xf32, #tpu.memory_space<vmem>>, %arg8: memref<1x8x1xf32, #tpu.memory_space<vmem>>, %arg9: memref<1x8x1xf32, #tpu.memory_space<vmem>>, %arg10: memref<128x128xbf16, #tpu.memory_space<vmem>>, %arg11: memref<1x128xf32, #tpu.memory_space<vmem>>, %arg12: memref<1x8x1xf32, #tpu.memory_space<vmem>>, %arg13: memref<1x8x1xf32, #tpu.memory_space<vmem>>, %arg14: memref<2x8x128xf32, #tpu.memory_space<vmem>>) attributes {dimension_semantics = [#tpu.dimension_semantics<parallel>], iteration_bounds = array<i64: 1>, scalar_prefetch = 0 : i64, scratch_operands = 0 : i64, tpu.core_type = #tpu.core_type<tc>, window_params = [{transform_indices = @transform_0, window_bounds = array<i64: 2, 8, 128>}, {pipeline_mode = #tpu.pipeline_mode<synchronous>, transform_indices = @transform_1, window_bounds = array<i64: 128, 128>}, {pipeline_mode = #tpu.pipeline_mode<synchronous>, transform_indices = @transform_2, window_bounds = array<i64: 1, 128>}, {transform_indices = @transform_3, window_bounds = array<i64: 1, 8, 1>}, {transform_indices = @transform_4, window_bounds = array<i64: 1, 8, 1>}, {pipeline_mode = #tpu.pipeline_mode<synchronous>, transform_indices = @transform_5, window_bounds = array<i64: 128, 128>}, {pipeline_mode = #tpu.pipeline_mode<synchronous>, transform_indices = @transform_6, window_bounds = array<i64: 1, 128>}, {transform_indices = @transform_7, window_bounds = array<i64: 1, 8, 1>}, {transform_indices = @transform_8, window_bounds = array<i64: 1, 8, 1>}, {pipeline_mode = #tpu.pipeline_mode<synchronous>, transform_indices = @transform_9, window_bounds = array<i64: 128, 128>}, {pipeline_mode = #tpu.pipeline_mode<synchronous>, transform_indices = @transform_10, window_bounds = array<i64: 1, 128>}, {transform_indices = @transform_11, window_bounds = array<i64: 1, 8, 1>}, {transform_indices = @transform_12, window_bounds = array<i64: 1, 8, 1>}, {transform_indices = @transform_13, window_bounds = array<i64: 2, 8, 128>}]} {
    %c0 = arith.constant 0 : index
    %c0_0 = arith.constant 0 : index
    %0 = vector.load %arg2[%c0, %c0_0] : memref<128x128xbf16, #tpu.memory_space<vmem>>, vector<128x128xbf16>
    %c0_1 = arith.constant 0 : index
    %c0_2 = arith.constant 0 : index
    %1 = vector.load %arg3[%c0_1, %c0_2] : memref<1x128xf32, #tpu.memory_space<vmem>>, vector<1x128xf32>
    %c0_3 = arith.constant 0 : index
    %c0_4 = arith.constant 0 : index
    %2 = vector.load %arg6[%c0_3, %c0_4] : memref<128x128xbf16, #tpu.memory_space<vmem>>, vector<128x128xbf16>
    %c0_5 = arith.constant 0 : index
    %c0_6 = arith.constant 0 : index
    %3 = vector.load %arg7[%c0_5, %c0_6] : memref<1x128xf32, #tpu.memory_space<vmem>>, vector<1x128xf32>
    %c0_7 = arith.constant 0 : index
    %c0_8 = arith.constant 0 : index
    %4 = vector.load %arg10[%c0_7, %c0_8] : memref<128x128xbf16, #tpu.memory_space<vmem>>, vector<128x128xbf16>
    %c0_9 = arith.constant 0 : index
    %c0_10 = arith.constant 0 : index
    %5 = vector.load %arg11[%c0_9, %c0_10] : memref<1x128xf32, #tpu.memory_space<vmem>>, vector<1x128xf32>
    %c0_11 = arith.constant 0 : index
    %c0_12 = arith.constant 0 : index
    %c0_13 = arith.constant 0 : index
    %6 = vector.load %arg4[%c0_11, %c0_12, %c0_13] : memref<1x8x1xf32, #tpu.memory_space<vmem>>, vector<1x8x1xf32>
    %c0_14 = arith.constant 0 : index
    %c0_15 = arith.constant 0 : index
    %c0_16 = arith.constant 0 : index
    %7 = vector.load %arg5[%c0_14, %c0_15, %c0_16] : memref<1x8x1xf32, #tpu.memory_space<vmem>>, vector<1x8x1xf32>
    %c0_17 = arith.constant 0 : index
    %c0_18 = arith.constant 0 : index
    %c0_19 = arith.constant 0 : index
    %8 = vector.load %arg8[%c0_17, %c0_18, %c0_19] : memref<1x8x1xf32, #tpu.memory_space<vmem>>, vector<1x8x1xf32>
    %c0_20 = arith.constant 0 : index
    %c0_21 = arith.constant 0 : index
    %c0_22 = arith.constant 0 : index
    %9 = vector.load %arg9[%c0_20, %c0_21, %c0_22] : memref<1x8x1xf32, #tpu.memory_space<vmem>>, vector<1x8x1xf32>
    %c0_23 = arith.constant 0 : index
    %c0_24 = arith.constant 0 : index
    %c0_25 = arith.constant 0 : index
    %10 = vector.load %arg12[%c0_23, %c0_24, %c0_25] : memref<1x8x1xf32, #tpu.memory_space<vmem>>, vector<1x8x1xf32>
    %c0_26 = arith.constant 0 : index
    %c0_27 = arith.constant 0 : index
    %c0_28 = arith.constant 0 : index
    %11 = vector.load %arg13[%c0_26, %c0_27, %c0_28] : memref<1x8x1xf32, #tpu.memory_space<vmem>>, vector<1x8x1xf32>
    %c0_29 = arith.constant 0 : index
    %c0_30 = arith.constant 0 : index
    %c0_31 = arith.constant 0 : index
    %12 = vector.load %arg1[%c0_29, %c0_30, %c0_31] : memref<2x8x128xf32, #tpu.memory_space<vmem>>, vector<2x8x128xf32>
    %13 = arith.truncf %12 : vector<2x8x128xf32> to vector<2x8x128xbf16>
    %14 = vector.shape_cast %13 : vector<2x8x128xbf16> to vector<16x128xbf16>
    %cst = arith.constant dense<0.000000e+00> : vector<16x128xf32>
    %15 = tpu.matmul %14, %0, %cst {dimension_numbers = #tpu.dot_dimension_numbers<[1], [0], [0], [1], [0, 0, 1, 1], [], []>} : vector<16x128xbf16>, vector<128x128xbf16>, vector<16x128xf32> -> vector<16x128xf32>
    %16 = vector.broadcast %1 : vector<1x128xf32> to vector<16x128xf32>
    %17 = arith.addf %15, %16 : vector<16x128xf32>
    %18 = vector.shape_cast %17 : vector<16x128xf32> to vector<2x8x128xf32>
    %cst_32 = arith.constant dense<0.000000e+00> : vector<8xf32>
    %19 = vector.multi_reduction <add>, %18, %cst_32 [0, 2] : vector<2x8x128xf32> to vector<8xf32>
    %20 = vector.shape_cast %19 : vector<8xf32> to vector<1x8x1xf32>
    %cst_33 = arith.constant 1.562500e-02 : f32
    %21 = vector.broadcast %cst_33 : f32 to vector<1x8x1xf32>
    %22 = arith.mulf %20, %21 : vector<1x8x1xf32>
    %23 = arith.mulf %18, %18 : vector<2x8x128xf32>
    %cst_34 = arith.constant dense<0.000000e+00> : vector<8xf32>
    %24 = vector.multi_reduction <add>, %23, %cst_34 [0, 2] : vector<2x8x128xf32> to vector<8xf32>
    %25 = vector.shape_cast %24 : vector<8xf32> to vector<1x8x1xf32>
    %cst_35 = arith.constant 1.562500e-02 : f32
    %26 = vector.broadcast %cst_35 : f32 to vector<1x8x1xf32>
    %27 = arith.mulf %25, %26 : vector<1x8x1xf32>
    %28 = arith.mulf %22, %22 : vector<1x8x1xf32>
    %29 = arith.subf %27, %28 : vector<1x8x1xf32>
    %cst_36 = arith.constant 0.000000e+00 : f32
    %30 = vector.broadcast %cst_36 : f32 to vector<1x8x1xf32>
    %31 = arith.maximumf %29, %30 : vector<1x8x1xf32>
    %cst_37 = arith.constant 9.99999974E-6 : f32
    %32 = vector.broadcast %cst_37 : f32 to vector<1x8x1xf32>
    %33 = arith.addf %31, %32 : vector<1x8x1xf32>
    %34 = math.rsqrt %33 : vector<1x8x1xf32>
    %35 = arith.mulf %6, %34 : vector<1x8x1xf32>
    %36 = arith.mulf %22, %35 : vector<1x8x1xf32>
    %37 = arith.subf %7, %36 : vector<1x8x1xf32>
    %38 = vector.broadcast %35 : vector<1x8x1xf32> to vector<2x8x128xf32>
    %39 = arith.mulf %18, %38 : vector<2x8x128xf32>
    %40 = vector.broadcast %37 : vector<1x8x1xf32> to vector<2x8x128xf32>
    %41 = arith.addf %39, %40 : vector<2x8x128xf32>
    %cst_38 = arith.constant 0.000000e+00 : f32
    %42 = vector.broadcast %cst_38 : f32 to vector<2x8x128xf32>
    %43 = arith.maximumf %41, %42 : vector<2x8x128xf32>
    %44 = vector.shape_cast %43 : vector<2x8x128xf32> to vector<16x128xf32>
    %45 = arith.truncf %44 : vector<16x128xf32> to vector<16x128xbf16>
    %cst_39 = arith.constant dense<0.000000e+00> : vector<16x128xf32>
    %46 = tpu.matmul %45, %2, %cst_39 {dimension_numbers = #tpu.dot_dimension_numbers<[1], [0], [0], [1], [0, 0, 1, 1], [], []>} : vector<16x128xbf16>, vector<128x128xbf16>, vector<16x128xf32> -> vector<16x128xf32>
    %47 = vector.broadcast %3 : vector<1x128xf32> to vector<16x128xf32>
    %48 = arith.addf %46, %47 : vector<16x128xf32>
    %49 = vector.shape_cast %48 : vector<16x128xf32> to vector<2x8x128xf32>
    %cst_40 = arith.constant dense<0.000000e+00> : vector<8xf32>
    %50 = vector.multi_reduction <add>, %49, %cst_40 [0, 2] : vector<2x8x128xf32> to vector<8xf32>
    %51 = vector.shape_cast %50 : vector<8xf32> to vector<1x8x1xf32>
    %cst_41 = arith.constant 1.562500e-02 : f32
    %52 = vector.broadcast %cst_41 : f32 to vector<1x8x1xf32>
    %53 = arith.mulf %51, %52 : vector<1x8x1xf32>
    %54 = arith.mulf %49, %49 : vector<2x8x128xf32>
    %cst_42 = arith.constant dense<0.000000e+00> : vector<8xf32>
    %55 = vector.multi_reduction <add>, %54, %cst_42 [0, 2] : vector<2x8x128xf32> to vector<8xf32>
    %56 = vector.shape_cast %55 : vector<8xf32> to vector<1x8x1xf32>
    %cst_43 = arith.constant 1.562500e-02 : f32
    %57 = vector.broadcast %cst_43 : f32 to vector<1x8x1xf32>
    %58 = arith.mulf %56, %57 : vector<1x8x1xf32>
    %59 = arith.mulf %53, %53 : vector<1x8x1xf32>
    %60 = arith.subf %58, %59 : vector<1x8x1xf32>
    %cst_44 = arith.constant 0.000000e+00 : f32
    %61 = vector.broadcast %cst_44 : f32 to vector<1x8x1xf32>
    %62 = arith.maximumf %60, %61 : vector<1x8x1xf32>
    %cst_45 = arith.constant 9.99999974E-6 : f32
    %63 = vector.broadcast %cst_45 : f32 to vector<1x8x1xf32>
    %64 = arith.addf %62, %63 : vector<1x8x1xf32>
    %65 = math.rsqrt %64 : vector<1x8x1xf32>
    %66 = arith.mulf %8, %65 : vector<1x8x1xf32>
    %67 = arith.mulf %53, %66 : vector<1x8x1xf32>
    %68 = arith.subf %9, %67 : vector<1x8x1xf32>
    %69 = vector.broadcast %66 : vector<1x8x1xf32> to vector<2x8x128xf32>
    %70 = arith.mulf %49, %69 : vector<2x8x128xf32>
    %71 = vector.broadcast %68 : vector<1x8x1xf32> to vector<2x8x128xf32>
    %72 = arith.addf %70, %71 : vector<2x8x128xf32>
    %cst_46 = arith.constant 0.000000e+00 : f32
    %73 = vector.broadcast %cst_46 : f32 to vector<2x8x128xf32>
    %74 = arith.maximumf %72, %73 : vector<2x8x128xf32>
    %75 = vector.shape_cast %74 : vector<2x8x128xf32> to vector<16x128xf32>
    %76 = arith.truncf %75 : vector<16x128xf32> to vector<16x128xbf16>
    %cst_47 = arith.constant dense<0.000000e+00> : vector<16x128xf32>
    %77 = tpu.matmul %76, %4, %cst_47 {dimension_numbers = #tpu.dot_dimension_numbers<[1], [0], [0], [1], [0, 0, 1, 1], [], []>} : vector<16x128xbf16>, vector<128x128xbf16>, vector<16x128xf32> -> vector<16x128xf32>
    %78 = vector.broadcast %5 : vector<1x128xf32> to vector<16x128xf32>
    %79 = arith.addf %77, %78 : vector<16x128xf32>
    %80 = vector.shape_cast %79 : vector<16x128xf32> to vector<2x8x128xf32>
    %cst_48 = arith.constant dense<0.000000e+00> : vector<8xf32>
    %81 = vector.multi_reduction <add>, %80, %cst_48 [0, 2] : vector<2x8x128xf32> to vector<8xf32>
    %82 = vector.shape_cast %81 : vector<8xf32> to vector<1x8x1xf32>
    %cst_49 = arith.constant 0.020833334 : f32
    %83 = vector.broadcast %cst_49 : f32 to vector<1x8x1xf32>
    %84 = arith.mulf %82, %83 : vector<1x8x1xf32>
    %85 = arith.mulf %80, %80 : vector<2x8x128xf32>
    %cst_50 = arith.constant dense<0.000000e+00> : vector<8xf32>
    %86 = vector.multi_reduction <add>, %85, %cst_50 [0, 2] : vector<2x8x128xf32> to vector<8xf32>
    %87 = vector.shape_cast %86 : vector<8xf32> to vector<1x8x1xf32>
    %cst_51 = arith.constant 0.020833334 : f32
    %88 = vector.broadcast %cst_51 : f32 to vector<1x8x1xf32>
    %89 = arith.mulf %87, %88 : vector<1x8x1xf32>
    %90 = arith.mulf %84, %84 : vector<1x8x1xf32>
    %91 = arith.subf %89, %90 : vector<1x8x1xf32>
    %cst_52 = arith.constant 0.000000e+00 : f32
    %92 = vector.broadcast %cst_52 : f32 to vector<1x8x1xf32>
    %93 = arith.maximumf %91, %92 : vector<1x8x1xf32>
    %cst_53 = arith.constant 9.99999974E-6 : f32
    %94 = vector.broadcast %cst_53 : f32 to vector<1x8x1xf32>
    %95 = arith.addf %93, %94 : vector<1x8x1xf32>
    %96 = math.rsqrt %95 : vector<1x8x1xf32>
    %97 = arith.mulf %10, %96 : vector<1x8x1xf32>
    %98 = arith.mulf %84, %97 : vector<1x8x1xf32>
    %99 = arith.subf %11, %98 : vector<1x8x1xf32>
    %100 = vector.broadcast %97 : vector<1x8x1xf32> to vector<2x8x128xf32>
    %101 = arith.mulf %80, %100 : vector<2x8x128xf32>
    %102 = vector.broadcast %99 : vector<1x8x1xf32> to vector<2x8x128xf32>
    %103 = arith.addf %101, %102 : vector<2x8x128xf32>
    %c0_54 = arith.constant 0 : index
    %c0_55 = arith.constant 0 : index
    %c0_56 = arith.constant 0 : index
    %104 = vector.load %arg14[%c0_54, %c0_55, %c0_56] : memref<2x8x128xf32, #tpu.memory_space<vmem>>, vector<2x8x128xf32>
    tpu.vector_store %arg14[%c0_54, %c0_55, %c0_56], %103 {strides = array<i32>} : memref<2x8x128xf32, #tpu.memory_space<vmem>>, vector<2x8x128xf32>,
    return
  }
  func.func @transform_0(%arg0: i32) -> (i32, i32, i32) {
    %c0_i32 = arith.constant 0 : i32
    %c0_i32_0 = arith.constant 0 : i32
    %c0_i32_1 = arith.constant 0 : i32
    return %c0_i32, %arg0, %c0_i32_0 : i32, i32, i32
  }
  func.func @transform_1(%arg0: i32) -> (i32, i32) {
    %c0_i32 = arith.constant 0 : i32
    %c0_i32_0 = arith.constant 0 : i32
    %c0_i32_1 = arith.constant 0 : i32
    return %c0_i32, %c0_i32_0 : i32, i32
  }
  func.func @transform_2(%arg0: i32) -> (i32, i32) {
    %c0_i32 = arith.constant 0 : i32
    %c0_i32_0 = arith.constant 0 : i32
    %c0_i32_1 = arith.constant 0 : i32
    return %c0_i32, %c0_i32_0 : i32, i32
  }
  func.func @transform_3(%arg0: i32) -> (i32, i32, i32) {
    %c0_i32 = arith.constant 0 : i32
    %c0_i32_0 = arith.constant 0 : i32
    %c0_i32_1 = arith.constant 0 : i32
    return %c0_i32, %arg0, %c0_i32_0 : i32, i32, i32
  }
  func.func @transform_4(%arg0: i32) -> (i32, i32, i32) {
    %c0_i32 = arith.constant 0 : i32
    %c0_i32_0 = arith.constant 0 : i32
    %c0_i32_1 = arith.constant 0 : i32
    return %c0_i32, %arg0, %c0_i32_0 : i32, i32, i32
  }
  func.func @transform_5(%arg0: i32) -> (i32, i32) {
    %c0_i32 = arith.constant 0 : i32
    %c0_i32_0 = arith.constant 0 : i32
    %c0_i32_1 = arith.constant 0 : i32
    return %c0_i32, %c0_i32_0 : i32, i32
  }
  func.func @transform_6(%arg0: i32) -> (i32, i32) {
    %c0_i32 = arith.constant 0 : i32
    %c0_i32_0 = arith.constant 0 : i32
    %c0_i32_1 = arith.constant 0 : i32
    return %c0_i32, %c0_i32_0 : i32, i32
  }
  func.func @transform_7(%arg0: i32) -> (i32, i32, i32) {
    %c0_i32 = arith.constant 0 : i32
    %c0_i32_0 = arith.constant 0 : i32
    %c0_i32_1 = arith.constant 0 : i32
    return %c0_i32, %arg0, %c0_i32_0 : i32, i32, i32
  }
  func.func @transform_8(%arg0: i32) -> (i32, i32, i32) {
    %c0_i32 = arith.constant 0 : i32
    %c0_i32_0 = arith.constant 0 : i32
    %c0_i32_1 = arith.constant 0 : i32
    return %c0_i32, %arg0, %c0_i32_0 : i32, i32, i32
  }
  func.func @transform_9(%arg0: i32) -> (i32, i32) {
    %c0_i32 = arith.constant 0 : i32
    %c0_i32_0 = arith.constant 0 : i32
    %c0_i32_1 = arith.constant 0 : i32
    return %c0_i32, %c0_i32_0 : i32, i32
  }
  func.func @transform_10(%arg0: i32) -> (i32, i32) {
    %c0_i32 = arith.constant 0 : i32
    %c0_i32_0 = arith.constant 0 : i32
    %c0_i32_1 = arith.constant 0 : i32
    return %c0_i32, %c0_i32_0 : i32, i32
  }
  func.func @transform_11(%arg0: i32) -> (i32, i32, i32) {
    %c0_i32 = arith.constant 0 : i32
    %c0_i32_0 = arith.constant 0 : i32
    %c0_i32_1 = arith.constant 0 : i32
    return %c0_i32, %arg0, %c0_i32_0 : i32, i32, i32
  }
  func.func @transform_12(%arg0: i32) -> (i32, i32, i32) {
    %c0_i32 = arith.constant 0 : i32
    %c0_i32_0 = arith.constant 0 : i32
    %c0_i32_1 = arith.constant 0 : i32
    return %c0_i32, %arg0, %c0_i32_0 : i32, i32, i32
  }
  func.func @transform_13(%arg0: i32) -> (i32, i32, i32) {
    %c0_i32 = arith.constant 0 : i32
    %c0_i32_0 = arith.constant 0 : i32
    %c0_i32_1 = arith.constant 0 : i32
    return %c0_i32, %arg0, %c0_i32_0 : i32, i32, i32
  }
}

</mosaic_0001>

<bundles_post_ra>
// kernel: tpu_custom_call.1
= control target key start
LH: loop header
LB: loop body
LE: loop exit
PB: predicated region body
PF: predicated region fallthrough
CT: control target
= control target key end

     0   :  { %18 = vsyncpa [#allocation3], 0  ;;  %s986_s0 = inlined_call_operand.hbm [shape: f32[2,8,128], index: 0, kind: input, shape index: {}]   ;;  %s987_s1 = inlined_call_operand.hbm [shape: bf16[128,128], index: 1, kind: input, shape index: {}]   ;;  %s988_s2 = inlined_call_operand.vmem [shape: f32[1,128], index: 2, kind: input, shape index: {}]   ;;  %s989_s3 = inlined_call_operand.vmem [shape: f32[1,8,1], index: 3, kind: input, shape index: {}]   ;;  %s990_s4 = inlined_call_operand.vmem [shape: f32[1,8,1], index: 4, kind: input, shape index: {}]   ;;  %s991_s5 = inlined_call_operand.hbm [shape: bf16[128,128], index: 5, kind: input, shape index: {}]   ;;  %s992_s6 = inlined_call_operand.vmem [shape: f32[1,128], index: 6, kind: input, shape index: {}]   ;;  %s993_s7 = inlined_call_operand.vmem [shape: f32[1,8,1], index: 7, kind: input, shape index: {}]   ;;  %s994_s8 = inlined_call_operand.vmem [shape: f32[1,8,1], index: 8, kind: input, shape index: {}]   ;;  %s995_s9 = inlined_call_operand.vmem [shape: bf16[128,128], index: 9, kind: input, shape index: {}]   ;;  %s996_s10 = inlined_call_operand.vmem [shape: f32[1,128], index: 10, kind: input, shape index: {}]   ;;  %s997_s11 = inlined_call_operand.vmem [shape: f32[1,8,1], index: 11, kind: input, shape index: {}]   ;;  %s998_s12 = inlined_call_operand.vmem [shape: f32[1,8,1], index: 12, kind: input, shape index: {}]   ;;  %s999_s13 = inlined_call_operand.hbm [shape: f32[2,8,128], index: 13, kind: output, shape index: {}]  }
   0x1   :  { %19 = vsyncpa [#allocation6], 0 }
   0x2   :  { %20 = vsyncpa [#allocation4], 0  ;;  %s806_s25 = smov [#allocation5]  }
   0x3   :  { %s38_s26 = sshll.u32 %s806_s25, 4  ;;  %s39_s26 = int_to_ptr.vmem [resolvable:$true] %s38_s26 }
   0x4   :  { %s728_s27 = scalar_lea.vmem %s39_s26, 1024  ;;  %p733_p1 = scmp.lt.s32.totalorder %s39_s26, %s39_s26 }
   0x5   :  { %p729_p0 = scmp.ne.s32.totalorder %s39_s26, %s728_s27  ;;  %p734_p2 = scmp.lt.s32.totalorder %s728_s27, %s728_s27 }
   0x7   :  { %p735_p3 = por %p734_p2, %p733_p1 }
   0x9   :  { %p736_p4 = pnand %p735_p3, %p729_p0 }
   0xb   :  { %739 = shalt.err (!%p736_p4)
}
   0xc   :  { %s807_s28 = smov 64   ;;  %s808_s29 = smov 4  }
   0xd   :  { %44 = dma.hbm_to_vmem [thread:$0]  %s987_s1, 1024, %s39_s26, [#allocation6], %s807_s28, %s807_s28, %s808_s29  }
   0xe   :  { %s809_s15 = smov [#allocation2]  }
   0xf   :  { %s26_s16 = sshll.u32 %s809_s15, 4  ;;  %s27_s16 = int_to_ptr.vmem [resolvable:$true] %s26_s16 }
  0x10   :  { %s748_s17 = scalar_lea.vmem %s27_s16, 256  ;;  %p753_p6 = scmp.lt.s32.totalorder %s27_s16, %s27_s16 }
  0x11   :  { %p749_p5 = scmp.ne.s32.totalorder %s27_s16, %s748_s17  ;;  %p754_p7 = scmp.lt.s32.totalorder %s748_s17, %s748_s17 }
  0x13   :  { %p755_p8 = por %p754_p7, %p753_p6 }
  0x15   :  { %p756_p9 = pnand %p755_p8, %p749_p5 }
  0x17   :  { %759 = shalt.err (!%p756_p9)
}
  0x18   :  { %s810_s18 = smov 128   ;;  %s811_s19 = smov 8  }
  0x19   :  { %32 = dma.hbm_to_vmem [thread:$0]  %s986_s0, 256, %s27_s16, [#allocation3], %s810_s18, %s810_s18, %s811_s19  }
  0x1a   :  { %s812_s1 = smov [#allocation7]  }
  0x1b   :  { %s56_s22 = sshll.u32 %s812_s1, 4  ;;  %s57_s22 = int_to_ptr.vmem [resolvable:$true] %s56_s22 }
  0x1c   :  { %s768_s23 = scalar_lea.vmem %s57_s22, 1024  ;;  %p773_p11 = scmp.lt.s32.totalorder %s57_s22, %s57_s22 }
  0x1d   :  { %p769_p10 = scmp.ne.s32.totalorder %s57_s22, %s768_s23  ;;  %p774_p12 = scmp.lt.s32.totalorder %s768_s23, %s768_s23 }
  0x1f   :  { %p775_p13 = por %p774_p12, %p773_p11 }
  0x21   :  { %p776_p0 = pnand %p775_p13, %p769_p10 }
  0x23   :  { %779 = shalt.err (!%p776_p0)
}
  0x24   :  { %62 = dma.hbm_to_vmem [thread:$0]  %s991_s5, 1024, %s57_s22, [#allocation6], %s807_s28, %s807_s28, %s808_s29  }
  0x25   :  { %800 = dma.done.wait [#allocation3], 256  }
  0x26   :  { %801 = vsyncadd [#allocation3], 4294967040 }
  0x27   :  { %802 = dma.done.wait [#allocation6], 2048  }
  0x28   :  { %803 = vsyncadd [#allocation6], 4294965248  ;;  %v813_v0 = vmov 0.0   ;;  %vm814_vm0 = vmmov 0   ;;  %v690_v1 = vld [vmem:[#allocation5 + $0x38] sm:$0xff]   ;;  %v691_v2 = vld [vmem:[#allocation5 + $0x30] sm:$0xff]  }
  0x29   :  { %617 = vmatprep.subr.bf16.mxu0 %v813_v0  ;;  %633 = vmatprep.mubr.msk.bf16.mxu0 %vm814_vm0, %v813_v0  ;;  %v692_v3 = vld [vmem:[#allocation5 + $0x28] sm:$0xff]   ;;  %v693_v4 = vld [vmem:[#allocation5 + $0x20] sm:$0xff]   ;;  %v694_v5 = vld [vmem:[#allocation5 + $0x18] sm:$0xff]   ;;  %v815_v23 = vmov 0   ;;  %s816_s29 = smov [#allocation8]  }
  0x2a   :  { %637 = vmatprep.subr.bf16.mxu1 %v813_v0  ;;  %653 = vmatprep.mubr.msk.bf16.mxu1 %vm814_vm0, %v813_v0  ;;  %v695_v6 = vld [vmem:[#allocation5 + $0x10] sm:$0xff]   ;;  %v696_v7 = vld [vmem:[#allocation5 + $0x8] sm:$0xff]   ;;  %v697_v8 = vld [vmem:[#allocation5] sm:$0xff]   ;;  %s548_s30 = sshll.u32 %s816_s29, 4  ;;  %s549_s30 = int_to_ptr.vmem [resolvable:$true] %s548_s30 }
  0x2b   :  { %618 = vmatpush3.bf16.msra.mxu0 %v690_v1  ;;  %v144_v9 = vld [vmem:[#allocation2] sm:$0xff]  ;;  %v145_v10 = vld [vmem:[#allocation2 + $0x8] sm:$0xff]  ;;  %688 = vset.pattern.permute.xlu1 %v815_v23  ;;  %v700_v26 = vld [vmem:[#allocation7 + $0x28] sm:$0xff]   ;;  %p785_p2 = scmp.lt.s32.totalorder %s549_s30, %s549_s30 }
  0x2c   :  { %619 = vmatprep.subr.bf16.mxu0 %v813_v0  ;;  %v589_v11 = vpack.c.bf16 %v145_v10, %v144_v9  ;;  %v561_v13 = vld [vmem:[%s988_s2] ss:$0 sm:$0xff]  ;;  %689 = vset.pattern.permute.xlu0 %v815_v23  ;;  %v698_v24 = vld [vmem:[#allocation7 + $0x38] sm:$0xff]   ;;  %v701_v27 = vld [vmem:[#allocation7 + $0x20] sm:$0xff]  }
  0x2d   :  { %638 = vmatpush3.bf16.msra.mxu1 %v698_v24  ;;  %v699_v25 = vld [vmem:[#allocation7 + $0x30] sm:$0xff]   ;;  %v702_v28 = vld [vmem:[#allocation7 + $0x18] sm:$0xff]   ;;  %v704_v39 = vld [vmem:[#allocation7 + $0x8] sm:$0xff]  }
  0x2e   :  { %639 = vmatprep.subr.bf16.mxu1 %v813_v0  ;;  %v703_v29 = vld [vmem:[#allocation7 + $0x10] sm:$0xff]   ;;  %v705_v44 = vld [vmem:[#allocation7] sm:$0xff]  }
  0x2f   :  { %620 = vmatpush3.bf16.msra.mxu0 %v691_v2  ;;  %v138_v38 = vld [vmem:[%s989_s3] sm:$0xff] }
  0x30   :  { %621 = vmatprep.subr.bf16.mxu0 %v813_v0  ;;  %v139_v42 = vld [vmem:[%s990_s4] sm:$0xff] }
  0x31   :  { %640 = vmatpush3.bf16.msra.mxu1 %v699_v25  ;;  %v571_v55 = vld [vmem:[%s992_s6] ss:$0 sm:$0xff] }
  0x32   :  { %641 = vmatprep.subr.bf16.mxu1 %v813_v0  ;;  %v713_v23 = vld [vmem:[%s995_s9] sm:$0xff]  }
  0x33   :  { %622 = vmatpush3.bf16.msra.mxu0 %v692_v3  ;;  %v706_v3 = vld [vmem:[%s995_s9 + $0x38] sm:$0xff]  }
  0x34   :  { %623 = vmatprep.subr.bf16.mxu0 %v813_v0 }
  0x35   :  { %642 = vmatpush3.bf16.msra.mxu1 %v700_v26 }
  0x36   :  { %643 = vmatprep.subr.bf16.mxu1 %v813_v0 }
  0x37   :  { %624 = vmatpush3.bf16.msra.mxu0 %v693_v4  ;;  %v707_v4 = vld [vmem:[%s995_s9 + $0x30] sm:$0xff]  }
  0x38   :  { %625 = vmatprep.subr.bf16.mxu0 %v813_v0 }
  0x39   :  { %644 = vmatpush3.bf16.msra.mxu1 %v701_v27 }
  0x3a   :  { %645 = vmatprep.subr.bf16.mxu1 %v813_v0 }
  0x3b   :  { %626 = vmatpush3.bf16.msra.mxu0 %v694_v5  ;;  %v708_v5 = vld [vmem:[%s995_s9 + $0x28] sm:$0xff]  }
  0x3c   :  { %627 = vmatprep.subr.bf16.mxu0 %v813_v0 }
  0x3d   :  { %646 = vmatpush3.bf16.msra.mxu1 %v702_v28 }
  0x3e   :  { %647 = vmatprep.subr.bf16.mxu1 %v813_v0 }
  0x3f   :  { %628 = vmatpush3.bf16.msra.mxu0 %v695_v6  ;;  %v709_v6 = vld [vmem:[%s995_s9 + $0x20] sm:$0xff]  }
  0x40   :  { %629 = vmatprep.subr.bf16.mxu0 %v813_v0 }
  0x41   :  { %648 = vmatpush3.bf16.msra.mxu1 %v703_v29 }
  0x42   :  { %649 = vmatprep.subr.bf16.mxu1 %v813_v0 }
  0x43   :  { %630 = vmatpush3.bf16.msra.mxu0 %v696_v7  ;;  %v710_v7 = vld [vmem:[%s995_s9 + $0x18] sm:$0xff]  }
  0x44   :  { %631 = vmatprep.subr.bf16.mxu0 %v813_v0 }
  0x45   :  { %650 = vmatpush3.bf16.msra.mxu1 %v704_v39 }
  0x46   :  { %651 = vmatprep.subr.bf16.mxu1 %v813_v0 }
  0x47   :  { %632 = vmatpush3.bf16.msra.mxu0 %v697_v8  ;;  %v711_v8 = vld [vmem:[%s995_s9 + $0x10] sm:$0xff]  }
  0x48   :  { %657 = vmatprep.subr.bf16.mxu0 %v813_v0 }
  0x49   :  { %652 = vmatpush3.bf16.msra.mxu1 %v705_v44 }
  0x4a   :  { %634 = vmatmul.mubr.bf16.vlgmr.msra.gmra.mxu0 %v589_v11 }
  0x4b   :  { %673 = vmatprep.mubr.msk.bf16.mxu0 %vm814_vm0, %v813_v0  ;;  %658 = vmatpush3.bf16.msra.mxu0 %v706_v3 }
  0x4c   :  { %659 = vmatprep.subr.bf16.mxu0 %v813_v0 }
  0x4f   :  { %660 = vmatpush3.bf16.msra.mxu0 %v707_v4 }
  0x50   :  { %661 = vmatprep.subr.bf16.mxu0 %v813_v0 }
  0x53   :  { %662 = vmatpush3.bf16.msra.mxu0 %v708_v5 }
  0x54   :  { %663 = vmatprep.subr.bf16.mxu0 %v813_v0 }
  0x57   :  { %664 = vmatpush3.bf16.msra.mxu0 %v709_v6 }
  0x58   :  { %665 = vmatprep.subr.bf16.mxu0 %v813_v0 }
  0x5b   :  { %666 = vmatpush3.bf16.msra.mxu0 %v710_v7 }
  0x5c   :  { %667 = vmatprep.subr.bf16.mxu0 %v813_v0 }
  0x5f   :  { %668 = vmatpush3.bf16.msra.mxu0 %v711_v8 }
  0x60   :  { %669 = vmatprep.subr.bf16.mxu0 %v813_v0 }
 0x10a   :  { %v242_v12 = vpop.f32.mrf.mxu0 }
 0x10b   :  { %v243_v16 = vadd.f32 %v561_v13, %v242_v12 }
 0x10c   :  { %v635_v14 = vpop.f32.mrf.mxu0 }
 0x10d   :  { %v253_v21 = vmul.f32 %v243_v16, %v243_v16 }
 0x10e   :  { %v245_v15 = vpop.f32.mrf.mxu0 }
 0x10f   :  { %v246_v17 = vadd.f32 %v561_v13, %v245_v15 }
 0x110   :  { %v636_v18 = vpop.f32.mrf.mxu0 }
 0x111   :  { %v249_v19 = vadd.f32 %v246_v17, %v243_v16  ;;  %v254_v20 = vmul.f32 %v246_v17, %v246_v17  ;;  %v712_v18 = vld [vmem:[%s995_s9 + $0x8] sm:$0xff]  }
 0x112   :  { %670 = vmatpush3.bf16.msra.mxu0 %v712_v18 }
 0x113   :  { %250 = vadd.xlane.f32.xlu0 %v249_v19  ;;  %v255_v22 = vadd.f32 %v254_v20, %v253_v21  ;;  %v141_v21 = vld [vmem:[%s994_s8] sm:$0xff]  ;;  %671 = vmatprep.subr.bf16.mxu0 %v813_v0 }
 0x114   :  { %v580_v0 = vld [vmem:[%s996_s10] ss:$0 sm:$0xff] }
 0x116   :  { %672 = vmatpush3.bf16.msra.mxu0 %v713_v23 }
 0x117   :  { %256 = vadd.xlane.f32.xlu0 %v255_v22 }
 0x19c   :  { %v251_v30 = vpop.xlane.xlu0 %250 }
 0x19d   :  { %v252_v31 = vmul.f32 0.015625, %v251_v30 }
 0x19f   :  { %v259_v33 = vmul.f32 %v252_v31, %v252_v31 }
 0x1a0   :  { %v257_v32 = vpop.xlane.xlu0 %256 }
 0x1a1   :  { %v258_v34 = vmul.f32 0.015625, %v257_v32 }
 0x1a3   :  { %v260_v35 = vsub.f32 %v258_v34, %v259_v33 }
 0x1a5   :  { %v261_v36 = vmax.f32 %v260_v35, 0.0 }
 0x1a7   :  { %v262_v37 = vadd.f32 1e-05, %v261_v36 }
 0x1a9   :  { %714 = vrsqrt.f32 %v262_v37 }
 0x1b6   :  { %v715_v40 = vpop.eup %714 }
 0x1b7   :  { %v264_v41 = vmul.f32 %v715_v40, %v138_v38 }
 0x1b9   :  { %269 = vperm.xlu1 %688, %v264_v41   ;;  %v265_v43 = vmul.f32 %v264_v41, %v252_v31 }
 0x1bb   :  { %v266_v45 = vsub.f32 %v139_v42, %v265_v43 }
 0x1bd   :  { %276 = vperm.xlu1 %688, %v266_v45  }
 0x234   :  { %v270_v46 = vpop.permute.xlu1 %269 }
 0x235   :  { %v272_v47 = vmul.f32 %v270_v46, %v243_v16  ;;  %v273_v48 = vmul.f32 %v270_v46, %v246_v17  ;;  %v140_v17 = vld [vmem:[%s993_s7] sm:$0xff] }
 0x238   :  { %v277_v49 = vpop.permute.xlu1 %276 }
 0x239   :  { %v279_v50 = vadd.f32 %v277_v49, %v272_v47  ;;  %v280_v51 = vadd.f32 %v277_v49, %v273_v48 }
 0x23b   :  { %v281_v52 = vmax.f32 %v279_v50, 0.0  ;;  %v282_v53 = vmax.f32 %v280_v51, 0.0 }
 0x23d   :  { %v283_v54 = vpack.c.bf16 %v282_v53, %v281_v52  ;;  %v142_v52 = vld [vmem:[%s997_s11] sm:$0xff]  ;;  %s780_s11 = scalar_lea.vmem %s549_s30, 256 }
 0x23e   :  { %p781_p1 = scmp.ne.s32.totalorder %s549_s30, %s780_s11  ;;  %p786_p3 = scmp.lt.s32.totalorder %s780_s11, %s780_s11 }
 0x23f   :  { %654 = vmatmul.mubr.bf16.vlgmr.msra.gmra.mxu1 %v283_v54 }
 0x240   :  { %p787_p4 = por %p786_p3, %p785_p2 }
 0x242   :  { %p788_p5 = pnand %p787_p4, %p781_p1 }
 0x2ff   :  { %v372_v56 = vpop.f32.mrf.mxu1 }
 0x300   :  { %v373_v58 = vadd.f32 %v571_v55, %v372_v56 }
 0x301   :  { %v655_v57 = vpop.f32.mrf.mxu1 }
 0x302   :  { %v383_v63 = vmul.f32 %v373_v58, %v373_v58 }
 0x303   :  { %v375_v59 = vpop.f32.mrf.mxu1 }
 0x304   :  { %v376_v60 = vadd.f32 %v571_v55, %v375_v59  ;;  %v143_v55 = vld [vmem:[%s998_s12] sm:$0xff] }
 0x305   :  { %v656_v61 = vpop.f32.mrf.mxu1 }
 0x306   :  { %v379_v62 = vadd.f32 %v376_v60, %v373_v58  ;;  %v384_v1 = vmul.f32 %v376_v60, %v376_v60 }
 0x308   :  { %380 = vadd.xlane.f32.xlu0 %v379_v62  ;;  %v385_v2 = vadd.f32 %v384_v1, %v383_v63 }
 0x30a   :  { %386 = vadd.xlane.f32.xlu1 %v385_v2 }
 0x391   :  { %v381_v9 = vpop.xlane.xlu0 %380 }
 0x392   :  { %v382_v10 = vmul.f32 0.015625, %v381_v9 }
 0x393   :  { %v387_v11 = vpop.xlane.xlu1 %386 }
 0x394   :  { %v389_v12 = vmul.f32 %v382_v10, %v382_v10  ;;  %v388_v13 = vmul.f32 0.015625, %v387_v11 }
 0x396   :  { %v390_v14 = vsub.f32 %v388_v13, %v389_v12 }
 0x398   :  { %v391_v15 = vmax.f32 %v390_v14, 0.0 }
 0x39a   :  { %v392_v16 = vadd.f32 1e-05, %v391_v15 }
 0x39c   :  { %716 = vrsqrt.f32 %v392_v16 }
 0x3a9   :  { %v717_v19 = vpop.eup %716 }
 0x3aa   :  { %v394_v20 = vmul.f32 %v717_v19, %v140_v17 }
 0x3ac   :  { %399 = vperm.xlu0 %689, %v394_v20   ;;  %v395_v22 = vmul.f32 %v394_v20, %v382_v10 }
 0x3ae   :  { %v396_v24 = vsub.f32 %v141_v21, %v395_v22 }
 0x3b0   :  { %406 = vperm.xlu1 %688, %v396_v24  }
 0x427   :  { %v400_v25 = vpop.permute.xlu0 %399 }
 0x428   :  { %v402_v26 = vmul.f32 %v400_v25, %v373_v58  ;;  %v403_v27 = vmul.f32 %v400_v25, %v376_v60 }
 0x42b   :  { %v407_v28 = vpop.permute.xlu1 %406 }
 0x42c   :  { %v409_v29 = vadd.f32 %v407_v28, %v402_v26  ;;  %v410_v30 = vadd.f32 %v407_v28, %v403_v27 }
 0x42e   :  { %v411_v31 = vmax.f32 %v409_v29, 0.0  ;;  %v412_v32 = vmax.f32 %v410_v30, 0.0 }
 0x430   :  { %v413_v33 = vpack.c.bf16 %v412_v32, %v411_v31 }
 0x432   :  { %674 = vmatmul.mubr.bf16.vlgmr.msra.gmra.mxu0 %v413_v33 }
 0x4f2   :  { %v502_v34 = vpop.f32.mrf.mxu0 }
 0x4f3   :  { %v503_v36 = vadd.f32 %v580_v0, %v502_v34 }
 0x4f4   :  { %v675_v35 = vpop.f32.mrf.mxu0 }
 0x4f5   :  { %v513_v41 = vmul.f32 %v503_v36, %v503_v36 }
 0x4f6   :  { %v505_v37 = vpop.f32.mrf.mxu0 }
 0x4f7   :  { %v506_v38 = vadd.f32 %v580_v0, %v505_v37 }
 0x4f8   :  { %v676_v39 = vpop.f32.mrf.mxu0 }
 0x4f9   :  { %v509_v40 = vadd.f32 %v506_v38, %v503_v36  ;;  %v514_v42 = vmul.f32 %v506_v38, %v506_v38 }
 0x4fb   :  { %510 = vadd.xlane.f32.xlu0 %v509_v40  ;;  %v515_v43 = vadd.f32 %v514_v42, %v513_v41 }
 0x4fd   :  { %516 = vadd.xlane.f32.xlu1 %v515_v43 }
 0x584   :  { %v511_v44 = vpop.xlane.xlu0 %510 }
 0x585   :  { %v512_v45 = vmul.f32 0.020833334, %v511_v44 }
 0x586   :  { %v517_v46 = vpop.xlane.xlu1 %516 }
 0x587   :  { %v519_v47 = vmul.f32 %v512_v45, %v512_v45  ;;  %v518_v48 = vmul.f32 0.020833334, %v517_v46 }
 0x589   :  { %v520_v49 = vsub.f32 %v518_v48, %v519_v47 }
 0x58b   :  { %v521_v50 = vmax.f32 %v520_v49, 0.0 }
 0x58d   :  { %v522_v51 = vadd.f32 1e-05, %v521_v50 }
 0x58f   :  { %718 = vrsqrt.f32 %v522_v51 }
 0x59c   :  { %v719_v53 = vpop.eup %718 }
 0x59d   :  { %v524_v54 = vmul.f32 %v719_v53, %v142_v52 }
 0x59f   :  { %529 = vperm.xlu0 %689, %v524_v54   ;;  %v525_v56 = vmul.f32 %v524_v54, %v512_v45 }
 0x5a1   :  { %v526_v57 = vsub.f32 %v143_v55, %v525_v56 }
 0x5a3   :  { %536 = vperm.xlu1 %688, %v526_v57  }
 0x61a   :  { %v530_v58 = vpop.permute.xlu0 %529 }
 0x61b   :  { %v532_v59 = vmul.f32 %v530_v58, %v503_v36  ;;  %v533_v60 = vmul.f32 %v530_v58, %v506_v38 }
 0x61e   :  { %v537_v61 = vpop.permute.xlu1 %536 }
 0x61f   :  { %v539_v62 = vadd.f32 %v537_v61, %v532_v59  ;;  %v540_v63 = vadd.f32 %v537_v61, %v533_v60 }
 0x621   :  { %541 = vst [vmem:[#allocation8] sm:$0xff] %v539_v62  ;;  %542 = vst [vmem:[#allocation8 + $0x8] sm:$0xff] %v540_v63 }
 0x622   :  { %791 = shalt.err (!%p788_p5)
}
 0x623   :  { %554 = dma.vmem_to_hbm [thread:$0]  %s549_s30, 256, %s999_s13, [#allocation4], %s810_s18, %s810_s18, %s811_s19  }
 0x624   :  { %804 = dma.done.wait [#allocation4], 256  }
 0x625   :  { %805 = vsyncadd [#allocation4], 4294967040 }
 0x626   :  { %558 = vsyncpa [#allocation3], 1 }
 0x627   :  { %559 = vsyncpa [#allocation6], 1 }
 0x628   :  { %560 = vsyncpa [#allocation4], 1 }

</bundles_post_ra>
